<compile_context>
chip_gen: v7x
topology: tpu7x:2x2x1
jax: 0.10.0
libtpu: 0.0.40
codegen_flags: <defaults>
</compile_context>

<pallas_src>
import functools

import jax
import jax.numpy as jnp
from jax.experimental import pallas as pl
from jax.experimental.pallas import tpu as pltpu

_EPS = 1e-6                      # torch.nn.functional.pairwise_distance default eps
_BLOCK_BUDGET_BYTES = 4 << 20    # per-input block budget (x 2 inputs x 2 pipeline buffers)


def _triplet_hinge_kernel(sr_ref, tg_ref, o_ref, *, margin, dim, total_rows, tile_rows):
    """Per-row triplet hinge for one row tile.

    sr_ref/tg_ref: (tile_rows, 2*dim) -- [:, :dim] is the 'true' slot, [:, dim:] the 'nega' slot.
    o_ref:         (tile_rows, 1)     -- h1 + h2 per row (0 for padded rows).
    """
    sr = sr_ref[...].astype(jnp.float32)
    tg = tg_ref[...].astype(jnp.float32)
    sr_t, sr_n = sr[:, :dim], sr[:, dim:]
    tg_t, tg_n = tg[:, :dim], tg[:, dim:]

    def l2(d):
        # torch pairwise_distance: ||x - y + eps||_2 (eps added elementwise, sign matters).
        return jnp.sqrt(jnp.sum(d * d, axis=-1, keepdims=True))   # (tile_rows, 1)

    d_ap1 = sr_t - tg_t + _EPS          # half 1: anchor=sr_true, positive=tg_true
    d_ap2 = (2.0 * _EPS) - d_ap1        # half 2: == tg_true - sr_true + eps (fused, 1 VALU op)
    d_an1 = sr_t - tg_n + _EPS          # half 1 negative: tg_nega
    d_an2 = tg_t - sr_n + _EPS          # half 2 negative: sr_nega

    h1 = jnp.maximum(l2(d_ap1) - l2(d_an1) + margin, 0.0)
    h2 = jnp.maximum(l2(d_ap2) - l2(d_an2) + margin, 0.0)
    hinge = h1 + h2                                               # (tile_rows, 1)

    if total_rows % tile_rows != 0:
        # Ragged last tile: zero padded rows (select after compute -> garbage/NaN safe).
        row = pl.program_id(0) * tile_rows + jax.lax.broadcasted_iota(jnp.int32, hinge.shape, 0)
        hinge = jnp.where(row < total_rows, hinge, 0.0)

    o_ref[...] = hinge


def _choose_row_tile(batch, width, dtype):
    """Row tile under the per-block VMEM budget, sublane-packed, >= ~4 grid steps."""
    itemsize = jnp.dtype(dtype).itemsize
    packing = max(1, 4 // itemsize)        # elements per 32-bit sublane word
    sub = 8 * packing                      # 8 (f32), 16 (bf16), 32 (int8/fp8)
    bytes_per_row = width * itemsize
    total_bytes = batch * bytes_per_row

    if total_bytes <= (256 << 10):
        return batch                       # tiny input: one block, pipelining is pure overhead

    rows = (_BLOCK_BUDGET_BYTES // max(1, bytes_per_row)) // sub * sub
    rows = max(sub, rows)
    # Keep >= ~4 grid steps so DMA overlaps compute and (on v7x) both TensorCores get work.
    rows_cap = pl.cdiv(pl.cdiv(batch, 4), sub) * sub
    rows = min(rows, max(sub, rows_cap))
    rows = min(rows, pl.cdiv(batch, sub) * sub)
    # TODO(synk): for extremely large D, add a trailing grid axis over D with partial
    # sum-of-squares accumulation; a single sublane-multiple row tile could otherwise
    # exceed the VMEM budget.
    return int(rows)


@functools.partial(jax.jit, static_argnames=("margin", "p", "re_scale", "row_tile"))
def special_loss_align(repre_sr, repre_tg, *, margin, p=2, re_scale=1.0, row_tile=None):
    """JAX/Pallas equivalent of SpecialLossAlign.forward (p=2, reduction='mean')."""
    assert p == 2, "Only p=2 (default TripletMarginLoss) is implemented"
    B, two, D = repre_sr.shape
    assert two == 2 and repre_tg.shape == (B, 2, D)

    # Free (bitcast) reshape under jit: the kernel reads each [B, 2, D] array exactly once,
    # contiguously — no strided slab copies are materialized in front of the pallas_call.
    sr = repre_sr.reshape(B, 2 * D)
    tg = repre_tg.reshape(B, 2 * D)

    itemsize = jnp.dtype(sr.dtype).itemsize
    sub = 8 * max(1, 4 // itemsize)
    if row_tile is not None:
        bt = int(row_tile)
        if bt != B:
            bt = max(sub, (bt // sub) * sub)   # keep the sublane/packing constraint
    else:
        bt = _choose_row_tile(B, 2 * D, sr.dtype)
    bt = min(bt, max(B, 1))

    grid = pl.cdiv(B, bt)
    padded_rows = grid * bt

    kernel = functools.partial(
        _triplet_hinge_kernel,
        margin=float(margin), dim=D, total_rows=B, tile_rows=bt,
    )

    row_spec = pl.BlockSpec((bt, 2 * D), lambda i: (i, 0))
    hinges = pl.pallas_call(
        kernel,
        out_shape=jax.ShapeDtypeStruct((padded_rows, 1), jnp.float32),
        grid_spec=pltpu.PrefetchScalarGridSpec(
            num_scalar_prefetch=0,
            grid=(grid,),
            in_specs=[row_spec, row_spec],
            out_specs=pl.BlockSpec((bt, 1), lambda i: (i, 0)),
        ),
        compiler_params=pltpu.CompilerParams(
            # Independent row tiles -> "parallel": on v7x both TensorCores stream rows;
            # no effect (and no cost) on single-TC v5e/v6e.
            dimension_semantics=("parallel",),
            # ~16 MiB of input double-buffers + temporaries; 48 MiB is safe on all
            # generations (v5e/v6e 128 MiB physical, v7x 64 MiB physical).
            vmem_limit_bytes=48 * 1024 * 1024,
        ),
    )(sr, tg)

    # 'mean' over the 2B triplets + re_scale, folded into one scalar (padded rows contribute 0).
    return jnp.sum(hinges) * (float(re_scale) / float(2 * B))


def _reference(repre_sr, repre_tg, margin, re_scale):
    # Pure-JAX reference (same math as torch TripletMarginLoss, eps=1e-6, reduction='mean').
    a = jnp.concatenate((repre_sr[:, 0], repre_tg[:, 0]), axis=0)
    p_ = jnp.concatenate((repre_tg[:, 0], repre_sr[:, 0]), axis=0)
    n_ = jnp.concatenate((repre_tg[:, 1], repre_sr[:, 1]), axis=0)
    d_ap = jnp.sqrt(jnp.sum((a - p_ + _EPS) ** 2, axis=-1))
    d_an = jnp.sqrt(jnp.sum((a - n_ + _EPS) ** 2, axis=-1))
    return jnp.mean(jnp.maximum(d_ap - d_an + margin, 0.0)) * re_scale


if __name__ == "__main__":
    margin = 1.0
    re_scale = 0.5

    # Small shapes consistent with the module: batch=2, embedding_dim=32.
    key = jax.random.PRNGKey(0)
    k1, k2 = jax.random.split(key)
    B, D = 2, 32
    repre_sr = jax.random.normal(k1, (B, 2, D), dtype=jnp.float32)
    repre_tg = jax.random.normal(k2, (B, 2, D), dtype=jnp.float32)

    loss = special_loss_align(repre_sr, repre_tg, margin=margin, p=2, re_scale=re_scale)
    jax.block_until_ready(loss)
    ref = _reference(repre_sr, repre_tg, margin, re_scale)
    assert jnp.allclose(loss, ref, rtol=1e-5, atol=1e-5), (loss, ref)

    # Also exercise the multi-tile + ragged-last-tile (masked) path with padded output rows.
    k3, k4 = jax.random.split(jax.random.PRNGKey(1))
    B2, D2 = 200, 128  # 200 is not a multiple of the 64-row tile -> masking path
    rs2 = jax.random.normal(k3, (B2, 2, D2), dtype=jnp.float32)
    rt2 = jax.random.normal(k4, (B2, 2, D2), dtype=jnp.float32)
    loss2 = special_loss_align(rs2, rt2, margin=margin, p=2, re_scale=re_scale, row_tile=64)
    jax.block_until_ready(loss2)
    ref2 = _reference(rs2, rt2, margin, re_scale)
    assert jnp.allclose(loss2, ref2, rtol=1e-4, atol=1e-5), (loss2, ref2)

    print("KERNEL_OK")
</pallas_src>

<mosaic_0001>
module attributes {stable_mosaic.version = 11 : i64} {
  func.func @_triplet_hinge_kernel(%arg0: i32, %arg1: memref<2x64xf32, #tpu.memory_space<vmem>>, %arg2: memref<2x64xf32, #tpu.memory_space<vmem>>, %arg3: memref<2x1xf32, #tpu.memory_space<vmem>>) attributes {dimension_semantics = [#tpu.dimension_semantics<parallel>], iteration_bounds = array<i64: 1>, scalar_prefetch = 0 : i64, scratch_operands = 0 : i64, tpu.core_type = #tpu.core_type<tc>, window_params = [{transform_indices = @transform_0, window_bounds = array<i64: 2, 64>}, {transform_indices = @transform_1, window_bounds = array<i64: 2, 64>}, {transform_indices = @transform_2, window_bounds = array<i64: 2, 1>}]} {
    %c0 = arith.constant 0 : index
    %c0_0 = arith.constant 0 : index
    %0 = vector.load %arg1[%c0, %c0_0] : memref<2x64xf32, #tpu.memory_space<vmem>>, vector<2x64xf32>
    %c0_1 = arith.constant 0 : index
    %c0_2 = arith.constant 0 : index
    %1 = vector.load %arg2[%c0_1, %c0_2] : memref<2x64xf32, #tpu.memory_space<vmem>>, vector<2x64xf32>
    %2 = vector.extract_strided_slice %0 {offsets = [0, 0], sizes = [2, 32], strides = [1, 1]} : vector<2x64xf32> to vector<2x32xf32>
    %3 = vector.extract_strided_slice %0 {offsets = [0, 32], sizes = [2, 32], strides = [1, 1]} : vector<2x64xf32> to vector<2x32xf32>
    %4 = vector.extract_strided_slice %1 {offsets = [0, 0], sizes = [2, 32], strides = [1, 1]} : vector<2x64xf32> to vector<2x32xf32>
    %5 = vector.extract_strided_slice %1 {offsets = [0, 32], sizes = [2, 32], strides = [1, 1]} : vector<2x64xf32> to vector<2x32xf32>
    %6 = arith.subf %2, %4 : vector<2x32xf32>
    %cst = arith.constant 9.99999997E-7 : f32
    %7 = vector.broadcast %cst : f32 to vector<2x32xf32>
    %8 = arith.addf %6, %7 : vector<2x32xf32>
    %cst_3 = arith.constant 2.000000e-06 : f32
    %9 = vector.broadcast %cst_3 : f32 to vector<2x32xf32>
    %10 = arith.subf %9, %8 : vector<2x32xf32>
    %11 = arith.subf %2, %5 : vector<2x32xf32>
    %cst_4 = arith.constant 9.99999997E-7 : f32
    %12 = vector.broadcast %cst_4 : f32 to vector<2x32xf32>
    %13 = arith.addf %11, %12 : vector<2x32xf32>
    %14 = arith.subf %4, %3 : vector<2x32xf32>
    %cst_5 = arith.constant 9.99999997E-7 : f32
    %15 = vector.broadcast %cst_5 : f32 to vector<2x32xf32>
    %16 = arith.addf %14, %15 : vector<2x32xf32>
    %17 = arith.mulf %8, %8 : vector<2x32xf32>
    %cst_6 = arith.constant dense<0.000000e+00> : vector<2xf32>
    %18 = vector.multi_reduction <add>, %17, %cst_6 [1] : vector<2x32xf32> to vector<2xf32>
    %19 = vector.shape_cast %18 : vector<2xf32> to vector<2x1xf32>
    %20 = math.sqrt %19 : vector<2x1xf32>
    %21 = arith.mulf %13, %13 : vector<2x32xf32>
    %cst_7 = arith.constant dense<0.000000e+00> : vector<2xf32>
    %22 = vector.multi_reduction <add>, %21, %cst_7 [1] : vector<2x32xf32> to vector<2xf32>
    %23 = vector.shape_cast %22 : vector<2xf32> to vector<2x1xf32>
    %24 = math.sqrt %23 : vector<2x1xf32>
    %25 = arith.subf %20, %24 : vector<2x1xf32>
    %cst_8 = arith.constant 1.000000e+00 : f32
    %26 = vector.broadcast %cst_8 : f32 to vector<2x1xf32>
    %27 = arith.addf %25, %26 : vector<2x1xf32>
    %cst_9 = arith.constant 0.000000e+00 : f32
    %28 = vector.broadcast %cst_9 : f32 to vector<2x1xf32>
    %29 = arith.maximumf %27, %28 : vector<2x1xf32>
    %30 = arith.mulf %10, %10 : vector<2x32xf32>
    %cst_10 = arith.constant dense<0.000000e+00> : vector<2xf32>
    %31 = vector.multi_reduction <add>, %30, %cst_10 [1] : vector<2x32xf32> to vector<2xf32>
    %32 = vector.shape_cast %31 : vector<2xf32> to vector<2x1xf32>
    %33 = math.sqrt %32 : vector<2x1xf32>
    %34 = arith.mulf %16, %16 : vector<2x32xf32>
    %cst_11 = arith.constant dense<0.000000e+00> : vector<2xf32>
    %35 = vector.multi_reduction <add>, %34, %cst_11 [1] : vector<2x32xf32> to vector<2xf32>
    %36 = vector.shape_cast %35 : vector<2xf32> to vector<2x1xf32>
    %37 = math.sqrt %36 : vector<2x1xf32>
    %38 = arith.subf %33, %37 : vector<2x1xf32>
    %cst_12 = arith.constant 1.000000e+00 : f32
    %39 = vector.broadcast %cst_12 : f32 to vector<2x1xf32>
    %40 = arith.addf %38, %39 : vector<2x1xf32>
    %cst_13 = arith.constant 0.000000e+00 : f32
    %41 = vector.broadcast %cst_13 : f32 to vector<2x1xf32>
    %42 = arith.maximumf %40, %41 : vector<2x1xf32>
    %43 = arith.addf %29, %42 : vector<2x1xf32>
    %c0_14 = arith.constant 0 : index
    %c0_15 = arith.constant 0 : index
    %44 = vector.load %arg3[%c0_14, %c0_15] : memref<2x1xf32, #tpu.memory_space<vmem>>, vector<2x1xf32>
    tpu.vector_store %arg3[%c0_14, %c0_15], %43 {strides = array<i32>} : memref<2x1xf32, #tpu.memory_space<vmem>>, vector<2x1xf32>,
    return
  }
  func.func @transform_0(%arg0: i32) -> (i32, i32) {
    %c0_i32 = arith.constant 0 : i32
    %c0_i32_0 = arith.constant 0 : i32
    return %arg0, %c0_i32 : i32, i32
  }
  func.func @transform_1(%arg0: i32) -> (i32, i32) {
    %c0_i32 = arith.constant 0 : i32
    %c0_i32_0 = arith.constant 0 : i32
    return %arg0, %c0_i32 : i32, i32
  }
  func.func @transform_2(%arg0: i32) -> (i32, i32) {
    %c0_i32 = arith.constant 0 : i32
    %c0_i32_0 = arith.constant 0 : i32
    return %arg0, %c0_i32 : i32, i32
  }
}

</mosaic_0001>

<bundles_post_ra>
// kernel: special_loss_align.1
= control target key start
LH: loop header
LB: loop body
LE: loop exit
PB: predicated region body
PF: predicated region fallthrough
CT: control target
= control target key end

     0   :  { %s95_s13 = smov 96   ;;  %vm29_vm0 = vcmask 254976   ;;  %vm80_vm9 = vcmask 1024   ;;  %s124_s1 = inlined_call_operand.vmem [shape: f32[2,64], index: 1, kind: input, shape index: {}]   ;;  %s125_s0 = inlined_call_operand.vmem [shape: f32[2,64], index: 0, kind: input, shape index: {}]   ;;  %s126_s2 = inlined_call_operand.vmem [shape: f32[2,1], index: 2, kind: output, shape index: {}]  }
   0x1   :  { %v12_v0 = vld [vmem:[%s124_s1] sm:$0x3] }
   0x2   :  { %v11_v1 = vld [vmem:[%s125_s0] sm:$0x3]  ;;  %17 = vrot.lane.b32.xlu0 %v12_v0, %s95_s13 }
   0x3   :  { %v13_v2 = vsub.f32 %v11_v1, %v12_v0 }
   0x5   :  { %v14_v3 = vadd.f32 1e-06, %v13_v2 }
   0x6   :  { %23 = vrot.lane.b32.xlu0 %v11_v1, %s95_s13 }
   0x7   :  { %v28_v4 = vmul.f32 %v14_v3, %v14_v3  ;;  %v15_v6 = vsub.f32 2e-06, %v14_v3 }
   0x9   :  { %v30_v5 = vsel %vm29_vm0, %v28_v4, 0.0  ;;  %v54_v7 = vmul.f32 %v15_v6, %v15_v6 }
   0xa   :  { %31 = vadd.xlane.f32.xlu1 %v30_v5 }
   0xb   :  { %v55_v8 = vsel %vm29_vm0, %v54_v7, 0.0 }
  0x25   :  { %56 = vadd.xlane.f32.xlu0 %v55_v8 }
  0x74   :  { %v18_v9 = vpop.permute.xlu0 %17 }
  0x75   :  { %v20_v10 = vsub.f32 %v11_v1, %v18_v9 }
  0x77   :  { %v21_v11 = vadd.f32 1e-06, %v20_v10 }
  0x78   :  { %v24_v12 = vpop.permute.xlu0 %23 }
  0x79   :  { %v40_v13 = vmul.f32 %v21_v11, %v21_v11  ;;  %v26_v14 = vsub.f32 %v12_v0, %v24_v12 }
  0x7b   :  { %v27_v15 = vadd.f32 1e-06, %v26_v14  ;;  %v41_v16 = vsel %vm29_vm0, %v40_v13, 0.0 }
  0x7c   :  { %42 = vadd.xlane.f32.xlu1 %v41_v16 }
  0x7d   :  { %v65_v17 = vmul.f32 %v27_v15, %v27_v15 }
  0x7f   :  { %v66_v18 = vsel %vm29_vm0, %v65_v17, 0.0 }
  0x80   :  { %67 = vadd.xlane.f32.xlu1 %v66_v18 }
  0x97   :  { %v32_v19 = vpop.xlane.xlu1 %31 }
  0x98   :  { %87 = vrsqrt.f32 %v32_v19  ;;  %vm35_vm1 = vcmp.eq.f32.partialorder %v32_v19, inf  ;;  %v38_v27 = vand.u32 2147483648, %v32_v19  ;;  %vm37_vm2 = vcmp.eq.f32.partialorder %v32_v19, 0.0 }
  0xa2   :  { %v88_v23 = vpop.eup %87 }
  0xa3   :  { %v34_v24 = vmul.f32 %v88_v23, %v32_v19 }
  0xa5   :  { %v36_v28 = vsel %vm35_vm1, %v32_v19, %v34_v24 }
  0xa6   :  { %v39_v34 = vsel %vm37_vm2, %v38_v27, %v36_v28 }
  0xb2   :  { %v57_v20 = vpop.xlane.xlu0 %56 }
  0xb3   :  { %89 = vrsqrt.f32 %v57_v20  ;;  %vm60_vm3 = vcmp.eq.f32.partialorder %v57_v20, inf  ;;  %v63_v35 = vand.u32 2147483648, %v57_v20  ;;  %vm62_vm6 = vcmp.eq.f32.partialorder %v57_v20, 0.0 }
  0xbd   :  { %v90_v25 = vpop.eup %89 }
  0xbe   :  { %v59_v29 = vmul.f32 %v90_v25, %v57_v20 }
  0xc0   :  { %v61_v37 = vsel %vm60_vm3, %v57_v20, %v59_v29 }
  0xc1   :  { %v64_v42 = vsel %vm62_vm6, %v63_v35, %v61_v37 }
 0x109   :  { %v43_v21 = vpop.xlane.xlu1 %42 }
 0x10a   :  { %91 = vrsqrt.f32 %v43_v21  ;;  %vm46_vm4 = vcmp.eq.f32.partialorder %v43_v21, inf  ;;  %v49_v31 = vand.u32 2147483648, %v43_v21  ;;  %vm48_vm5 = vcmp.eq.f32.partialorder %v43_v21, 0.0 }
 0x10d   :  { %v68_v22 = vpop.xlane.xlu1 %67 }
 0x10e   :  { %93 = vrsqrt.f32 %v68_v22  ;;  %vm71_vm7 = vcmp.eq.f32.partialorder %v68_v22, inf  ;;  %v74_v40 = vand.u32 2147483648, %v68_v22  ;;  %vm73_vm8 = vcmp.eq.f32.partialorder %v68_v22, 0.0 }
 0x114   :  { %v92_v26 = vpop.eup %91 }
 0x115   :  { %v45_v30 = vmul.f32 %v92_v26, %v43_v21 }
 0x117   :  { %v47_v32 = vsel %vm46_vm4, %v43_v21, %v45_v30 }
 0x118   :  { %v94_v33 = vpop.eup %93  ;;  %v50_v36 = vsel %vm48_vm5, %v49_v31, %v47_v32 }
 0x119   :  { %v51_v38 = vsub.f32 %v39_v34, %v50_v36  ;;  %v70_v39 = vmul.f32 %v94_v33, %v68_v22 }
 0x11b   :  { %v72_v41 = vsel %vm71_vm7, %v68_v22, %v70_v39  ;;  %v52_v44 = vadd.f32 1.0, %v51_v38 }
 0x11c   :  { %v75_v43 = vsel %vm73_vm8, %v74_v40, %v72_v41 }
 0x11d   :  { %v76_v45 = vsub.f32 %v64_v42, %v75_v43  ;;  %v53_v47 = vmax.f32 %v52_v44, 0.0 }
 0x11f   :  { %v77_v46 = vadd.f32 1.0, %v76_v45 }
 0x121   :  { %v78_v48 = vmax.f32 %v77_v46, 0.0 }
 0x123   :  { %v79_v49 = vadd.f32 %v78_v48, %v53_v47 }
 0x125   :  { %81 = vst.msk [vmem:[%s126_s2] sm:$0x3] %vm80_vm9, %v79_v49 }

</bundles_post_ra>
